<compile_context>
chip_gen: v6e
topology: v6e:2x2x1
jax: 0.10.0
libtpu: 0.0.40
codegen_flags: <defaults>
</compile_context>

<pallas_src>
import functools

import jax
import jax.numpy as jnp
from jax import lax
from jax.experimental import pallas as pl
from jax.experimental.pallas import tpu as pltpu


# ---------------------------------------------------------------------------
# Fused VSA kernel: one grid step processes `nb` images (channel-major).
# ---------------------------------------------------------------------------
def _vsa_kernel(x_ref, wfold_ref, wproj_ref, o_ref, *, w):
    """Shapes of the refs (per grid step):
         x_ref:     (nb, C, HW)      channel-major pixels of nb images
         wfold_ref: (3*C2, 9*C)      folded (depthwise 3x3 (x) pointwise 1x1)
         wproj_ref: (C, C2)          project_out 1x1 weights
         o_ref:     (nb, C, HW)      output, channel-major (HW lane-dense)
    """
    nb, C, HW = x_ref.shape
    C3 = wfold_ref.shape[0]
    C2 = C3 // 3
    P = w + 1                        # pad so every tap offset stays in-bounds

    # ---- loop-invariant setup (runs once per grid step) ---------------------
    wfold = wfold_ref[...]
    wproj = wproj_ref[...]

    # Column-validity masks for the x-1 / x+1 taps (pre-broadcast, hoisted).
    col = lax.broadcasted_iota(jnp.int32, (1, HW), 1) % w
    mask_l = jnp.broadcast_to(col >= 1, (C, HW))        # reading column x-1
    mask_r = jnp.broadcast_to(col < (w - 1), (C, HW))   # reading column x+1
    col_masks = (mask_l, None, mask_r)

    # Zero border on the flattened (h*w) pixel axis: provides the conv's
    # vertical zero padding (out-of-image rows read zeros).
    zrow = jnp.zeros((C, P), jnp.float32)

    def body(i, carry):
        x_img = x_ref[i]                                          # (C, HW)
        xp = jnp.concatenate([zrow, x_img, zrow], axis=-1)        # (C, HW+2P)

        # 9 shifted + column-masked copies of the image, stacked along the
        # (aligned) sublane axis -> single folded conv matmul on the MXU.
        taps = []
        for t in range(9):
            di, dj = divmod(t, 3)
            off = (di - 1) * w + (dj - 1)
            tap = xp[:, P + off:P + off + HW]                     # (C, HW)
            m = col_masks[dj]
            if m is not None:
                tap = jnp.where(m, tap, 0.0)
            taps.append(tap)
        tapmat = jnp.concatenate(taps, axis=0)                    # (9*C, HW)

        # pointwise 1x1 + depthwise 3x3 for all of q,k,v in ONE matmul.
        qkv = jnp.dot(wfold, tapmat,
                      preferred_element_type=jnp.float32)         # (3*C2, HW)
        q = qkv[0:C2]
        k = qkv[C2:2 * C2]
        v = qkv[2 * C2:3 * C2]

        # F.normalize(dim=-1):  x / max(||x||_2, 1e-12), rsqrt on the EUP.
        def l2n(t):
            ss = jnp.sum(t * t, axis=-1, keepdims=True)           # (C2, 1)
            return t * lax.rsqrt(jnp.maximum(ss, 1e-24))

        qn = l2n(q)
        kn = l2n(k)

        # Channel attention: att = q_n @ k_n^T (contract over HW), softmax.
        att = lax.dot_general(qn, kn, (((1,), (1,)), ((), ())),
                              preferred_element_type=jnp.float32)  # (C2, C2)
        att = att - jnp.max(att, axis=-1, keepdims=True)
        e = jnp.exp(att)
        att = e * pl.reciprocal(jnp.sum(e, axis=-1, keepdims=True), approx=True)

        # out = att @ v, then project_out, emitted directly as (C, HW).
        out_att = jnp.dot(att, v, preferred_element_type=jnp.float32)   # (C2, HW)
        o_ref[i] = jnp.dot(wproj, out_att,
                           preferred_element_type=jnp.float32).astype(o_ref.dtype)
        return carry

    lax.fori_loop(0, nb, body, 0)


# ---------------------------------------------------------------------------
# Wrapper
# ---------------------------------------------------------------------------
def _pick_image_block(n_images, img_bytes, target_bytes=4 << 20,
                      vmem_budget=24 << 20):
    """Largest divisor of n_images with ~target_bytes of activations per step,
    keeping double-buffered in+out blocks under the VMEM budget (safe for
    v7x's 64 MiB VMEM), at least two grid steps, and preferring an even number
    of steps so both v7x TensorCores get balanced work."""
    if n_images <= 1:
        return 1
    per_img_vmem = 5 * img_bytes          # 2x in + 2x out (double-buffered) + slack
    cap = min(max(1, target_bytes // max(img_bytes, 1)),
              max(1, vmem_budget // max(per_img_vmem, 1)),
              n_images // 2)
    cap = max(int(cap), 1)
    best_even, best_any = None, None
    for d in range(1, cap + 1):
        if n_images % d == 0:
            best_any = d
            if (n_images // d) % 2 == 0:
                best_even = d
    return best_even or best_any or 1


def vsa_forward(x6, w_pw, w_dw, w_proj):
    """x6: (b, c, ah, aw, h, w) f32; weights in PyTorch OIHW layout."""
    b, c, ah, aw, h, w = x6.shape
    C = ah * aw                    # ang_res2 (conv channels after rearrange)
    assert C % 2 == 0
    C2 = C // 2
    C3 = 3 * C2
    HW = h * w
    N = b * c
    assert w_pw.shape == (C3, C, 1, 1)
    assert w_dw.shape == (C3, 1, 3, 3)
    assert w_proj.shape == (C, C2, 1, 1)

    # 'b c ah aw h w -> (b c) (ah aw) (h w)' is a pure reshape: channel-major,
    # no wrapper-side transpose of the activations at all.
    x_cm = x6.reshape(N, C, HW)

    # Fold the 1x1 pointwise conv into the depthwise 3x3 conv once:
    #   W_fold[ch, t*C + in] = wdw[ch, t] * wpw[ch, in]
    wpw_m = w_pw[:, :, 0, 0]                                   # (3*C2, C)
    wdw_m = w_dw[:, 0, :, :].reshape(C3, 9)                    # (3*C2, 9)
    w_fold = (wdw_m[:, :, None] * wpw_m[:, None, :]).reshape(C3, 9 * C)
    wproj_m = w_proj[:, :, 0, 0]                               # (C, C2)

    img_bytes = C * HW * 4
    nb = _pick_image_block(N, img_bytes)
    grid = (N // nb,)

    # Explicit scoped-VMEM limit sized to the double-buffered blocks.
    est = 6 * nb * img_bytes + 4 * (w_fold.size + wproj_m.size) + (1 << 20)
    vmem_limit = int(min(40 << 20, max(32 << 20, est)))

    out = pl.pallas_call(
        functools.partial(_vsa_kernel, w=w),
        out_shape=jax.ShapeDtypeStruct((N, C, HW), jnp.float32),
        grid=grid,
        in_specs=[
            pl.BlockSpec((nb, C, HW), lambda n: (n, 0, 0)),
            pl.BlockSpec((C3, 9 * C), lambda n: (0, 0)),
            pl.BlockSpec((C, C2), lambda n: (0, 0)),
        ],
        out_specs=pl.BlockSpec((nb, C, HW), lambda n: (n, 0, 0)),
        compiler_params=pltpu.CompilerParams(
            dimension_semantics=("parallel",),
            vmem_limit_bytes=vmem_limit),
    )(x_cm, w_fold, wproj_m)

    # '(b c) (ah aw) (h w) -> b c ah aw h w' — pure reshape, no transpose.
    return out.reshape(b, c, ah, aw, h, w)


# ---------------------------------------------------------------------------
# Pure-JAX reference (for correctness check)
# ---------------------------------------------------------------------------
def vsa_reference(x6, w_pw, w_dw, w_proj):
    b, c, ah, aw, h, w = x6.shape
    C = ah * aw
    C2 = C // 2
    N = b * c
    hi = lax.Precision.HIGHEST
    dn = ('NCHW', 'OIHW', 'NCHW')
    x = x6.reshape(N, C, h, w)
    pw = lax.conv_general_dilated(x, w_pw, (1, 1), 'VALID',
                                  dimension_numbers=dn, precision=hi)
    qkv = lax.conv_general_dilated(pw, w_dw, (1, 1), ((1, 1), (1, 1)),
                                   dimension_numbers=dn,
                                   feature_group_count=w_dw.shape[0],
                                   precision=hi)
    q, k, v = jnp.split(qkv, 3, axis=1)
    q = q.reshape(N, C2, h * w)
    k = k.reshape(N, C2, h * w)
    v = v.reshape(N, C2, h * w)

    def l2n(t):
        return t / jnp.maximum(
            jnp.sqrt(jnp.sum(t * t, axis=-1, keepdims=True)), 1e-12)

    q = l2n(q)
    k = l2n(k)
    att = jnp.einsum('ncp,nep->nce', q, k, precision=hi)
    att = jax.nn.softmax(att, axis=-1)
    out = jnp.einsum('nce,nep->ncp', att, v, precision=hi)
    out = out.reshape(N, C2, h, w)
    out = lax.conv_general_dilated(out, w_proj, (1, 1), 'VALID',
                                   dimension_numbers=dn, precision=hi)
    return out.reshape(b, c, ah, aw, h, w)


# ---------------------------------------------------------------------------
if __name__ == "__main__":
    key = jax.random.PRNGKey(0)
    b, c, ah, aw, h, w = 2, 4, 4, 4, 8, 8       # ang_res2 = ah*aw = 16
    C = ah * aw
    C2 = C // 2
    C3 = 3 * C2

    k1, k2, k3, k4 = jax.random.split(key, 4)
    x6 = jax.random.normal(k1, (b, c, ah, aw, h, w), jnp.float32)
    w_pw = jax.random.normal(k2, (C3, C, 1, 1), jnp.float32) * 0.2
    w_dw = jax.random.normal(k3, (C3, 1, 3, 3), jnp.float32) * 0.2
    w_proj = jax.random.normal(k4, (C, C2, 1, 1), jnp.float32) * 0.2

    fwd = jax.jit(vsa_forward)
    out = jax.block_until_ready(fwd(x6, w_pw, w_dw, w_proj))

    ref = vsa_reference(x6, w_pw, w_dw, w_proj)
    assert out.shape == (b, c, ah, aw, h, w)
    err = float(jnp.max(jnp.abs(out - ref)))
    assert jnp.allclose(out, ref, atol=2e-2, rtol=2e-2), err
    print("KERNEL_OK")
</pallas_src>

<mosaic_0001>
module attributes {stable_mosaic.version = 11 : i64} {
  func.func @_vsa_kernel(%arg0: i32, %arg1: memref<4x16x64xf32, #tpu.memory_space<vmem>>, %arg2: memref<24x144xf32, #tpu.memory_space<vmem>>, %arg3: memref<16x8xf32, #tpu.memory_space<vmem>>, %arg4: memref<4x16x64xf32, #tpu.memory_space<vmem>>) attributes {dimension_semantics = [#tpu.dimension_semantics<parallel>], iteration_bounds = array<i64: 2>, scalar_prefetch = 0 : i64, scratch_operands = 0 : i64, tpu.core_type = #tpu.core_type<tc>, window_params = [{transform_indices = @transform_0, window_bounds = array<i64: 4, 16, 64>}, {pipeline_mode = #tpu.pipeline_mode<synchronous>, transform_indices = @transform_1, window_bounds = array<i64: 24, 144>}, {pipeline_mode = #tpu.pipeline_mode<synchronous>, transform_indices = @transform_2, window_bounds = array<i64: 16, 8>}, {transform_indices = @transform_3, window_bounds = array<i64: 4, 16, 64>}]} {
    %c0 = arith.constant 0 : index
    %c0_0 = arith.constant 0 : index
    %0 = vector.load %arg2[%c0, %c0_0] : memref<24x144xf32, #tpu.memory_space<vmem>>, vector<24x144xf32>
    %c0_1 = arith.constant 0 : index
    %c0_2 = arith.constant 0 : index
    %1 = vector.load %arg3[%c0_1, %c0_2] : memref<16x8xf32, #tpu.memory_space<vmem>>, vector<16x8xf32>
    %2 = tpu.iota {dimensions = array<i32: 1>} : vector<1x64xi32>
    %c8_i32 = arith.constant 8 : i32
    %c0_i32 = arith.constant 0 : i32
    %3 = arith.cmpi eq, %c8_i32, %c0_i32 : i32
    %c1_i32 = arith.constant 1 : i32
    %4 = arith.select %3, %c1_i32, %c8_i32 : i32
    %5 = vector.broadcast %4 : i32 to vector<1x64xi32>
    %6 = arith.remsi %2, %5 : vector<1x64xi32>
    %c0_i32_3 = arith.constant 0 : i32
    %7 = vector.broadcast %c0_i32_3 : i32 to vector<1x64xi32>
    %8 = arith.cmpi ne, %6, %7 : vector<1x64xi32>
    %c0_i32_4 = arith.constant 0 : i32
    %9 = vector.broadcast %c0_i32_4 : i32 to vector<1x64xi32>
    %10 = arith.cmpi slt, %6, %9 : vector<1x64xi32>
    %c0_i32_5 = arith.constant 0 : i32
    %11 = arith.cmpi slt, %4, %c0_i32_5 : i32
    %12 = vector.broadcast %11 : i1 to vector<1x64xi1>
    %13 = vector.broadcast %12 : vector<1x64xi1> to vector<1x64xi1>
    %14 = arith.xori %10, %13 : vector<1x64xi1>
    %15 = arith.andi %14, %8 : vector<1x64xi1>
    %16 = vector.broadcast %4 : i32 to vector<1x64xi32>
    %17 = arith.addi %6, %16 : vector<1x64xi32>
    %18 = arith.select %15, %17, %6 : vector<1x64xi1>, vector<1x64xi32>
    %c1_i32_6 = arith.constant 1 : i32
    %19 = vector.broadcast %c1_i32_6 : i32 to vector<1x64xi32>
    %20 = arith.cmpi sge, %18, %19 : vector<1x64xi32>
    %21 = vector.shape_cast %20 : vector<1x64xi1> to vector<1x64xi1>
    %22 = vector.broadcast %21 : vector<1x64xi1> to vector<16x64xi1>
    %c7_i32 = arith.constant 7 : i32
    %23 = vector.broadcast %c7_i32 : i32 to vector<1x64xi32>
    %24 = arith.cmpi slt, %18, %23 : vector<1x64xi32>
    %25 = vector.shape_cast %24 : vector<1x64xi1> to vector<1x64xi1>
    %26 = vector.broadcast %25 : vector<1x64xi1> to vector<16x64xi1>
    %cst = arith.constant 0.000000e+00 : f32
    %27 = vector.broadcast %cst : f32 to vector<16x9xf32>
    %c0_i32_7 = arith.constant 0 : i32
    %c4_i32 = arith.constant 4 : i32
    %28 = arith.addi %c0_i32_7, %c4_i32 : i32
    %c1_i32_8 = arith.constant 1 : i32
    scf.for %arg5 = %c0_i32_7 to %28 step %c1_i32_8  : i32 {
      %29 = arith.index_cast %arg5 : i32 to index
      %c0_10 = arith.constant 0 : index
      %c0_11 = arith.constant 0 : index
      %30 = vector.load %arg1[%29, %c0_10, %c0_11] : memref<4x16x64xf32, #tpu.memory_space<vmem>>, vector<1x16x64xf32>
      %31 = vector.shape_cast %30 : vector<1x16x64xf32> to vector<16x64xf32>
      %32 = tpu.concatenate %27, %31, %27 in 1 : vector<16x9xf32>, vector<16x64xf32>, vector<16x9xf32> -> vector<16x82xf32>
      %33 = vector.extract_strided_slice %32 {offsets = [0, 0], sizes = [16, 64], strides = [1, 1]} : vector<16x82xf32> to vector<16x64xf32>
      %cst_12 = arith.constant 0.000000e+00 : f32
      %34 = vector.broadcast %cst_12 : f32 to vector<16x64xf32>
      %35 = arith.select %22, %33, %34 : vector<16x64xi1>, vector<16x64xf32>
      %36 = vector.extract_strided_slice %32 {offsets = [0, 1], sizes = [16, 64], strides = [1, 1]} : vector<16x82xf32> to vector<16x64xf32>
      %37 = vector.extract_strided_slice %32 {offsets = [0, 2], sizes = [16, 64], strides = [1, 1]} : vector<16x82xf32> to vector<16x64xf32>
      %cst_13 = arith.constant 0.000000e+00 : f32
      %38 = vector.broadcast %cst_13 : f32 to vector<16x64xf32>
      %39 = arith.select %26, %37, %38 : vector<16x64xi1>, vector<16x64xf32>
      %40 = vector.extract_strided_slice %32 {offsets = [0, 8], sizes = [16, 64], strides = [1, 1]} : vector<16x82xf32> to vector<16x64xf32>
      %cst_14 = arith.constant 0.000000e+00 : f32
      %41 = vector.broadcast %cst_14 : f32 to vector<16x64xf32>
      %42 = arith.select %22, %40, %41 : vector<16x64xi1>, vector<16x64xf32>
      %43 = vector.extract_strided_slice %32 {offsets = [0, 9], sizes = [16, 64], strides = [1, 1]} : vector<16x82xf32> to vector<16x64xf32>
      %44 = vector.extract_strided_slice %32 {offsets = [0, 10], sizes = [16, 64], strides = [1, 1]} : vector<16x82xf32> to vector<16x64xf32>
      %cst_15 = arith.constant 0.000000e+00 : f32
      %45 = vector.broadcast %cst_15 : f32 to vector<16x64xf32>
      %46 = arith.select %26, %44, %45 : vector<16x64xi1>, vector<16x64xf32>
      %47 = vector.extract_strided_slice %32 {offsets = [0, 16], sizes = [16, 64], strides = [1, 1]} : vector<16x82xf32> to vector<16x64xf32>
      %cst_16 = arith.constant 0.000000e+00 : f32
      %48 = vector.broadcast %cst_16 : f32 to vector<16x64xf32>
      %49 = arith.select %22, %47, %48 : vector<16x64xi1>, vector<16x64xf32>
      %50 = vector.extract_strided_slice %32 {offsets = [0, 17], sizes = [16, 64], strides = [1, 1]} : vector<16x82xf32> to vector<16x64xf32>
      %51 = vector.extract_strided_slice %32 {offsets = [0, 18], sizes = [16, 64], strides = [1, 1]} : vector<16x82xf32> to vector<16x64xf32>
      %cst_17 = arith.constant 0.000000e+00 : f32
      %52 = vector.broadcast %cst_17 : f32 to vector<16x64xf32>
      %53 = arith.select %26, %51, %52 : vector<16x64xi1>, vector<16x64xf32>
      %54 = tpu.concatenate %35, %36, %39, %42, %43, %46, %49, %50, %53 in 0 : vector<16x64xf32>, vector<16x64xf32>, vector<16x64xf32>, vector<16x64xf32>, vector<16x64xf32>, vector<16x64xf32>, vector<16x64xf32>, vector<16x64xf32>, vector<16x64xf32> -> vector<144x64xf32>
      %cst_18 = arith.constant dense<0.000000e+00> : vector<24x64xf32>
      %55 = tpu.matmul %0, %54, %cst_18 {dimension_numbers = #tpu.dot_dimension_numbers<[1], [0], [0], [1], [0, 0, 1, 1], [], []>} : vector<24x144xf32>, vector<144x64xf32>, vector<24x64xf32> -> vector<24x64xf32>
      %56 = vector.extract_strided_slice %55 {offsets = [0, 0], sizes = [8, 64], strides = [1, 1]} : vector<24x64xf32> to vector<8x64xf32>
      %57 = vector.extract_strided_slice %55 {offsets = [8, 0], sizes = [8, 64], strides = [1, 1]} : vector<24x64xf32> to vector<8x64xf32>
      %58 = vector.extract_strided_slice %55 {offsets = [16, 0], sizes = [8, 64], strides = [1, 1]} : vector<24x64xf32> to vector<8x64xf32>
      %59 = arith.mulf %56, %56 : vector<8x64xf32>
      %cst_19 = arith.constant dense<0.000000e+00> : vector<8xf32>
      %60 = vector.multi_reduction <add>, %59, %cst_19 [1] : vector<8x64xf32> to vector<8xf32>
      %61 = vector.shape_cast %60 : vector<8xf32> to vector<8x1xf32>
      %cst_20 = arith.constant 1.000000e-24 : f32
      %62 = vector.broadcast %cst_20 : f32 to vector<8x1xf32>
      %63 = arith.maximumf %61, %62 : vector<8x1xf32>
      %64 = math.rsqrt %63 : vector<8x1xf32>
      %65 = vector.broadcast %64 : vector<8x1xf32> to vector<8x64xf32>
      %66 = arith.mulf %56, %65 : vector<8x64xf32>
      %67 = arith.mulf %57, %57 : vector<8x64xf32>
      %cst_21 = arith.constant dense<0.000000e+00> : vector<8xf32>
      %68 = vector.multi_reduction <add>, %67, %cst_21 [1] : vector<8x64xf32> to vector<8xf32>
      %69 = vector.shape_cast %68 : vector<8xf32> to vector<8x1xf32>
      %cst_22 = arith.constant 1.000000e-24 : f32
      %70 = vector.broadcast %cst_22 : f32 to vector<8x1xf32>
      %71 = arith.maximumf %69, %70 : vector<8x1xf32>
      %72 = math.rsqrt %71 : vector<8x1xf32>
      %73 = vector.broadcast %72 : vector<8x1xf32> to vector<8x64xf32>
      %74 = arith.mulf %57, %73 : vector<8x64xf32>
      %cst_23 = arith.constant dense<0.000000e+00> : vector<8x8xf32>
      %75 = tpu.matmul %66, %74, %cst_23 {dimension_numbers = #tpu.dot_dimension_numbers<[1], [1], [0], [0], [0, 0, 1, 0], [], []>} : vector<8x64xf32>, vector<8x64xf32>, vector<8x8xf32> -> vector<8x8xf32>
      %cst_24 = arith.constant dense<0xFF800000> : vector<8xf32>
      %76 = vector.multi_reduction <maximumf>, %75, %cst_24 [1] : vector<8x8xf32> to vector<8xf32>
      %77 = vector.shape_cast %76 : vector<8xf32> to vector<8x1xf32>
      %78 = vector.broadcast %77 : vector<8x1xf32> to vector<8x8xf32>
      %79 = arith.subf %75, %78 : vector<8x8xf32>
      %80 = math.exp %79 : vector<8x8xf32>
      %cst_25 = arith.constant dense<0.000000e+00> : vector<8xf32>
      %81 = vector.multi_reduction <add>, %80, %cst_25 [1] : vector<8x8xf32> to vector<8xf32>
      %82 = vector.shape_cast %81 : vector<8xf32> to vector<8x1xf32>
      %83 = tpu.reciprocal %82 {approx = true} : vector<8x1xf32> -> vector<8x1xf32>
      %84 = vector.broadcast %83 : vector<8x1xf32> to vector<8x8xf32>
      %85 = arith.mulf %80, %84 : vector<8x8xf32>
      %cst_26 = arith.constant dense<0.000000e+00> : vector<8x64xf32>
      %86 = tpu.matmul %85, %58, %cst_26 {dimension_numbers = #tpu.dot_dimension_numbers<[1], [0], [0], [1], [0, 0, 1, 1], [], []>} : vector<8x8xf32>, vector<8x64xf32>, vector<8x64xf32> -> vector<8x64xf32>
      %cst_27 = arith.constant dense<0.000000e+00> : vector<16x64xf32>
      %87 = tpu.matmul %1, %86, %cst_27 {dimension_numbers = #tpu.dot_dimension_numbers<[1], [0], [0], [1], [0, 0, 1, 1], [], []>} : vector<16x8xf32>, vector<8x64xf32>, vector<16x64xf32> -> vector<16x64xf32>
      %88 = arith.index_cast %arg5 : i32 to index
      %c0_28 = arith.constant 0 : index
      %c0_29 = arith.constant 0 : index
      %89 = vector.load %arg4[%88, %c0_28, %c0_29] : memref<4x16x64xf32, #tpu.memory_space<vmem>>, vector<1x16x64xf32>
      %90 = vector.shape_cast %89 : vector<1x16x64xf32> to vector<16x64xf32>
      %91 = vector.shape_cast %87 : vector<16x64xf32> to vector<1x16x64xf32>
      tpu.vector_store %arg4[%88, %c0_28, %c0_29], %91 {strides = array<i32>} : memref<4x16x64xf32, #tpu.memory_space<vmem>>, vector<1x16x64xf32>,
    }
    %c4_i32_9 = arith.constant 4 : i32
    return
  }
  func.func @transform_0(%arg0: i32) -> (i32, i32, i32) {
    %c0_i32 = arith.constant 0 : i32
    %c0_i32_0 = arith.constant 0 : i32
    %c0_i32_1 = arith.constant 0 : i32
    return %arg0, %c0_i32, %c0_i32_0 : i32, i32, i32
  }
  func.func @transform_1(%arg0: i32) -> (i32, i32) {
    %c0_i32 = arith.constant 0 : i32
    %c0_i32_0 = arith.constant 0 : i32
    %c0_i32_1 = arith.constant 0 : i32
    return %c0_i32, %c0_i32_0 : i32, i32
  }
  func.func @transform_2(%arg0: i32) -> (i32, i32) {
    %c0_i32 = arith.constant 0 : i32
    %c0_i32_0 = arith.constant 0 : i32
    %c0_i32_1 = arith.constant 0 : i32
    return %c0_i32, %c0_i32_0 : i32, i32
  }
  func.func @transform_3(%arg0: i32) -> (i32, i32, i32) {
    %c0_i32 = arith.constant 0 : i32
    %c0_i32_0 = arith.constant 0 : i32
    %c0_i32_1 = arith.constant 0 : i32
    return %arg0, %c0_i32, %c0_i32_0 : i32, i32, i32
  }
}

</mosaic_0001>

<bundles_post_ra>
// kernel: mul.8
= control target key start
LH: loop header
LB: loop body
LE: loop exit
PB: predicated region body
PF: predicated region fallthrough
CT: control target
= control target key end

     0   :  { %vm17_vm0 = vcmask 195584   ;;  %s62_s0 = inlined_call_operand.vmem [shape: f32[24,3,3], index: 0, kind: input, shape index: {}]   ;;  %s63_s1 = inlined_call_operand.vmem [shape: f32[24,9], index: 1, kind: output, shape index: {}]  }
   0x1   :  { %v30_v0 = vld [vmem:[%s62_s0 + $0x8] sm:$0xf]  ;;  %v31_v1 = vld [vmem:[%s62_s0 + $0x4] sm:$0xf]  ;;  %v14_v2 = vld [vmem:[%s62_s0] sm:$0xf] }
   0x2   :  { %9 = vst [vmem:[#allocation0] sm:$0xf] %v30_v0  ;;  %13 = vst [vmem:[#allocation0 + $0x10] sm:$0xf] %v31_v1 }
   0x3   :  { %15 = vst [vmem:[#allocation0 + $0x8] sm:$0xf] %v14_v2 }
   0x9   :  { %v20_v4 = vld [vmem:[#allocation0 + $0x10] sm:$0x7]   ;;  %v25_v5 = vld [vmem:[#allocation0] sm:$0x7]  }
   0xa   :  { %v16_v3 = vld [vmem:[#allocation0 + $0x8] sm:$0x7]   ;;  %32 = vst.msk [vmem:[%s63_s1 + $0x3] sm:$0x7] %vm17_vm0, %v20_v4   ;;  %33 = vst.msk [vmem:[%s63_s1 + $0x6] sm:$0x7] %vm17_vm0, %v25_v5  }
   0xb   :  { %18 = vst.msk [vmem:[%s63_s1] sm:$0x7] %vm17_vm0, %v16_v3  }

// kernel: vsa_forward.1
= control target key start
LH: loop header
LB: loop body
LE: loop exit
PB: predicated region body
PF: predicated region fallthrough
CT: control target
= control target key end

     0   :  { %s850_s12 = smov 0   ;;  %s1024_s0 = inlined_call_operand.vmem [shape: f32[8,16,64], index: 0, kind: input, shape index: {}]   ;;  %s1025_s1 = inlined_call_operand.vmem [shape: f32[24,144], index: 1, kind: input, shape index: {}]   ;;  %s1026_s2 = inlined_call_operand.vmem [shape: f32[16,8], index: 2, kind: input, shape index: {}]   ;;  %s1027_s3 = inlined_call_operand.vmem [shape: f32[8,16,64], index: 3, kind: output, shape index: {}]  }
   0x1 LB: > { %s710_s13 = sadd.s32 4294967295, %s813_s12   ;;  %p714_p0 = scmp.ge.s32.totalorder %s813_s12, 1  ;;  %s813_s12 = sphi %s850_s12, %s13_s12  }
   0x2   : > { %p139_p1 = scmp.lt.s32.totalorder %s813_s12, 3 }
   0x4   : > { %p140_p2 = pnand %p714_p0, %p139_p1 }
   0x5   : > { %s715_s14 = sshll.u32 (!%p140_p2), %s710_s13, 2  ;;  %s916_s11 = smov (!%p140_p2), 0  }
   0x6   : > { %143 = sbr.rel (%p140_p2) target bundleno = 1545 (0x609), region = 32  ;;  %p166_p3 = scmp.lt.s32.totalorder (!%p140_p2), %s715_s14, 7 }
   0xb   : > { %v861_v0 = vld [vmem:[%s1025_s1] sm:$0xff]  ;;  %v866_v1 = vld [vmem:[%s1025_s1 + $0x8] sm:$0xff]  ;;  %v871_v2 = vld [vmem:[%s1025_s1 + $0x10] sm:$0xff]  ;;  %v187_v3 = vlaneseq  ;;  %s1033_s14 = smov (!%p166_p3, %s715_s14), 7 }
   0xc   : > { %v876_v4 = vld [vmem:[%s1025_s1 + $0x18] sm:$0xff]  ;;  %v881_v5 = vld [vmem:[%s1025_s1 + $0x20] sm:$0xff]  ;;  %v886_v6 = vld [vmem:[%s1025_s1 + $0x28] sm:$0xff]  ;;  %s744_s4 = sshll.u32 %s1033_s14, 4 }
   0xd   : > { %v891_v7 = vld [vmem:[%s1026_s2] sm:$0xff]  ;;  %v896_v8 = vld [vmem:[%s1026_s2 + $0x8] sm:$0xff]  ;;  %v188_v9 = vand.u32 127, %v187_v3  ;;  %s901_s7 = scalar_lea.vmem %s1024_s0, %s744_s4  ;;  %s906_s10 = scalar_lea.vmem %s1027_s3, %s744_s4 }
   0xf   : > { %v193_v10 = vand.u32 7, %v188_v9 }
  0x11   : > { %vm908_vm0 = vcmp.ge.s32.totalorder %v193_v10, 1  ;;  %vm912_vm1 = vcmp.lt.s32.totalorder %v193_v10, 7 }
  0x12 LB: >> { %s721_s13 = sshll.u32 %s817_s11, 4  ;;  %s819_s15 = smov 9   ;;  %v820_v15 = vmov 0.0   ;;  %vm225_vm2 = vcmask 72704   ;;  %vm228_vm3 = vcmask 596992   ;;  %vm293_vm4 = vcmask 130048   ;;  %s817_s11 = sphi %s916_s11, %s212_s11  }
  0x13   : >> { %s214_s14 = scalar_lea.vmem %s901_s7, %s721_s13  ;;  %303 = vmatprep.subr.mxu0 %v820_v15  ;;  %753 = vmatprep.subr.mxu1 %v820_v15  ;;  %s821_s16 = smov 111   ;;  %vm384_vm5 = vcmask 523264   ;;  %vm829_vm6 = vmmov 0   ;;  %vm474_vm7 = vcmask 64512  }
  0x14   : >> { %v216_v13 = vld [vmem:[%s214_s14 + $0x8] sm:$0xff]  ;;  %v215_v14 = vld [vmem:[%s214_s14] sm:$0xff]  ;;  %s822_s17 = smov 112   ;;  %s823_s18 = smov 118   ;;  %734 = vmatprep.mubr.msk.f32.mxu0 %vm293_vm4, %v866_v1  ;;  %755 = vmatprep.mubr.msk.f32.mxu1 %vm829_vm6, %v820_v15 }
  0x15   : >> { %221 = vrot.lane.b32.xlu0 %v216_v13, %s819_s15  ;;  %s824_s19 = smov 119   ;;  %s825_s20 = smov 120  }
  0x16   : >> { %s826_s21 = smov 126   ;;  %s827_s22 = smov 127  }
  0x17   : >> { %s828_s23 = smov 110   ;;  %s640_s24 = scalar_lea.vmem %s906_s10, %s721_s13 }
  0x18   : >> { %s212_s11 = sadd.s32 1, %s817_s11  }
  0x19   : >> { %219 = vrot.lane.b32.xlu0 %v215_v14, %s819_s15  ;;  %p209_p4 = scmp.ge.s32.totalorder %s212_s11, 4  }
  0x87   : >> { %v222_v16 = vpop.permute.xlu0 %221 }
  0x88   : >> { %v227_v17 = vsel %vm225_vm2, 0.0, %v222_v16 }
  0x89   : >> { %v927_v18 = vsel %vm228_vm3, %v227_v17, 0.0 }
  0x8a   : >> { %289 = vrot.lane.b32.xlu1 %v927_v18, %s821_s16  ;;  %261 = vrot.lane.b32.xlu0 %v927_v18, %s822_s17 }
  0x8b   : >> { %v220_v19 = vpop.permute.xlu0 %219 }
  0x8c   : >> { %v226_v20 = vsel %vm225_vm2, 0.0, %v220_v19 }
  0x8d   : >> { %v931_v21 = vsel %vm228_vm3, %v226_v20, 0.0 }
  0x8e   : >> { %253 = vrot.lane.b32.xlu0 %v927_v18, %s823_s18  ;;  %287 = vrot.lane.b32.xlu1 %v931_v21, %s821_s16 }
  0x92   : >> { %283 = vrot.lane.b32.xlu0 %v927_v18, %s824_s19  ;;  %259 = vrot.lane.b32.xlu1 %v931_v21, %s822_s17 }
  0x96   : >> { %245 = vrot.lane.b32.xlu0 %v927_v18, %s825_s20  ;;  %251 = vrot.lane.b32.xlu1 %v931_v21, %s823_s18 }
  0x9a   : >> { %237 = vrot.lane.b32.xlu0 %v927_v18, %s826_s21  ;;  %281 = vrot.lane.b32.xlu1 %v931_v21, %s824_s19 }
  0x9e   : >> { %277 = vrot.lane.b32.xlu0 %v927_v18, %s827_s22  ;;  %243 = vrot.lane.b32.xlu1 %v931_v21, %s825_s20 }
  0xa2   : >> { %269 = vrot.lane.b32.xlu0 %v927_v18, %s828_s23  ;;  %235 = vrot.lane.b32.xlu1 %v931_v21, %s826_s21 }
  0xa6   : >> { %275 = vrot.lane.b32.xlu1 %v931_v21, %s827_s22 }
  0xaa   : >> { %267 = vrot.lane.b32.xlu1 %v931_v21, %s828_s23 }
  0xfc   : >> { %v290_v22 = vpop.permute.xlu1 %289  ;;  %v262_v23 = vpop.permute.xlu0 %261 }
  0xfd   : >> { %304 = vmatpush1.msra.mxu0 %v290_v22 }
  0xfe   : >> { %305 = vmatprep.subr.mxu0 %v820_v15 }
 0x100   : >> { %v288_v24 = vpop.permute.xlu1 %287  ;;  %v254_v25 = vpop.permute.xlu0 %253 }
 0x101   : >> { %306 = vmatpush1.msra.mxu0 %v288_v24 }
 0x102   : >> { %307 = vmatprep.subr.mxu0 %v820_v15 }
 0x103   : >> { %722 = vmatpush1.msk.msra.mxu0 %vm908_vm0, %v262_v23 }
 0x104   : >> { %v260_v26 = vpop.permute.xlu1 %259  ;;  %309 = vmatprep.subr.mxu0 %v820_v15  ;;  %v284_v27 = vpop.permute.xlu0 %283 }
 0x105   : >> { %723 = vmatpush1.msk.msra.mxu0 %vm908_vm0, %v260_v26 }
 0x106   : >> { %311 = vmatprep.subr.mxu0 %v820_v15 }
 0x107   : >> { %724 = vmatpush1.msk.msra.mxu0 %vm912_vm1, %v254_v25 }
 0x108   : >> { %v252_v28 = vpop.permute.xlu1 %251  ;;  %313 = vmatprep.subr.mxu0 %v820_v15  ;;  %v246_v29 = vpop.permute.xlu0 %245 }
 0x109   : >> { %725 = vmatpush1.msk.msra.mxu0 %vm912_vm1, %v252_v28 }
 0x10a   : >> { %315 = vmatprep.subr.mxu0 %v820_v15 }
 0x10b   : >> { %316 = vmatpush1.msra.mxu0 %v284_v27 }
 0x10c   : >> { %v282_v30 = vpop.permute.xlu1 %281  ;;  %317 = vmatprep.subr.mxu0 %v820_v15  ;;  %v238_v31 = vpop.permute.xlu0 %237 }
 0x10d   : >> { %318 = vmatpush1.msra.mxu0 %v282_v30 }
 0x10e   : >> { %319 = vmatprep.subr.mxu0 %v820_v15 }
 0x10f   : >> { %726 = vmatpush1.msk.msra.mxu0 %vm908_vm0, %v246_v29 }
 0x110   : >> { %v244_v32 = vpop.permute.xlu1 %243  ;;  %321 = vmatprep.subr.mxu0 %v820_v15  ;;  %v278_v34 = vpop.permute.xlu0 %277 }
 0x111   : >> { %727 = vmatpush1.msk.msra.mxu0 %vm908_vm0, %v244_v32 }
 0x112   : >> { %323 = vmatprep.subr.mxu0 %v820_v15 }
 0x113   : >> { %728 = vmatpush1.msk.msra.mxu0 %vm912_vm1, %v238_v31 }
 0x114   : >> { %v236_v33 = vpop.permute.xlu1 %235  ;;  %325 = vmatprep.subr.mxu0 %v820_v15  ;;  %v270_v36 = vpop.permute.xlu0 %269 }
 0x115   : >> { %729 = vmatpush1.msk.msra.mxu0 %vm912_vm1, %v236_v33 }
 0x116   : >> { %327 = vmatprep.subr.mxu0 %v820_v15 }
 0x117   : >> { %328 = vmatpush1.msra.mxu0 %v278_v34 }
 0x118   : >> { %v276_v35 = vpop.permute.xlu1 %275  ;;  %329 = vmatprep.subr.mxu0 %v820_v15 }
 0x119   : >> { %330 = vmatpush1.msra.mxu0 %v276_v35 }
 0x11a   : >> { %331 = vmatprep.subr.mxu0 %v820_v15 }
 0x11b   : >> { %730 = vmatpush1.msk.msra.mxu0 %vm908_vm0, %v927_v18 }
 0x11c   : >> { %333 = vmatprep.subr.mxu0 %v820_v15  ;;  %v268_v37 = vpop.permute.xlu1 %267 }
 0x11d   : >> { %731 = vmatpush1.msk.msra.mxu0 %vm908_vm0, %v931_v21 }
 0x11e   : >> { %363 = vmatprep.subr.mxu0 %v820_v15 }
 0x11f   : >> { %732 = vmatpush2.msk.msra.mxu0 %vm912_vm1, %v270_v36 }
 0x120   : >> { %365 = vmatprep.subr.mxu0 %v820_v15 }
 0x121   : >> { %733 = vmatpush2.msk.msra.mxu0 %vm912_vm1, %v268_v37 }
 0x122   : >> { %368 = vmatmul.mubr.f32.vlgmr.msra.gmra.mxu0 %v861_v0 }
 0x123   : >> { %735 = vmatprep.mubr.msk.f32.mxu0 %vm293_vm4, %v876_v4 }
 0x126   : >> { %373 = vmatmul.mubr.f32.gmra.mxu0 %v871_v2 }
 0x127   : >> { %736 = vmatprep.mubr.msk.f32.mxu0 %vm293_vm4, %v886_v6 }
 0x12a   : >> { %378 = vmatmul.mubr.f32.gmra.mxu0 %v881_v5 }
 0x1e2   : >> { %v369_v38 = vpop.f32.mrf.mxu0 }
 0x1e3   : >> { %v383_v39 = vmul.f32 %v369_v38, %v369_v38 }
 0x1e4   : >> { %v371_v40 = vpop.f32.mrf.mxu0 }
 0x1e5   : >> { %v385_v41 = vsel %vm384_vm5, %v383_v39, 0.0 }
 0x1e6   : >> { %386 = vadd.xlane.f32.xlu1 %v385_v41  ;;  %v374_v42 = vpop.f32.mrf.mxu0 }
 0x1e7   : >> { %v391_v43 = vmul.f32 %v374_v42, %v374_v42 }
 0x1e8   : >> { %v376_v44 = vpop.f32.mrf.mxu0 }
 0x1e9   : >> { %v392_v45 = vsel %vm384_vm5, %v391_v43, 0.0 }
 0x1ea   : >> { %393 = vadd.xlane.f32.xlu0 %v392_v45  ;;  %v379_v62 = vpop.f32.mrf.mxu0 }
 0x1ec   : >> { %v381_v63 = vpop.f32.mrf.mxu0 }
 0x26f   : >> { %v387_v46 = vpop.xlane.xlu1 %386 }
 0x270   : >> { %v388_v47 = vmax.f32 %v387_v46, 1e-24 }
 0x273   : >> { %v394_v48 = vpop.xlane.xlu0 %393 }
 0x274   : >> { %v395_v49 = vmax.f32 %v394_v48, 1e-24 }
 0x276   : >> { %795 = vrsqrt.f32 %v395_v49 }
 0x277   : >> { %797 = vrsqrt.f32 %v388_v47 }
 0x283   : >> { %v796_v50 = vpop.eup %795 }
 0x284   : >> { %v798_v51 = vpop.eup %797  ;;  %v397_v52 = vmul.f32 %v796_v50, %v374_v42 }
 0x285   : >> { %v390_v53 = vmul.f32 %v798_v51, %v369_v38 }
 0x286   : >> { %754 = vmatpush3.xpose.msk.msra.mxu1 %vm384_vm5, %v397_v52 }
 0x287   : >> { %758 = vmatprep.subr.mxu1 %v820_v15 }
 0x289   : >> { %756 = vmatmul.mubr.msk.f32.vlgmr.msra.gmra.mxu1 %vm384_vm5, %v390_v53 }
 0x28a   : >> { %760 = vmatprep.mubr.msk.f32.mxu1 %vm829_vm6, %v820_v15  ;;  %759 = vmatpush3.msra.mxu1 %v379_v62 }
 0x349   : >> { %v470_v54 = vpop.f32.mrf.mxu1 }
 0x34a   : >> { %v475_v55 = vsel %vm474_vm7, %v470_v54, -inf }
 0x34b   : >> { %476 = vmax.xlane.f32.xlu0 %v475_v55  ;;  %v757_v56 = vpop.f32.mrf.mxu1 }
 0x3d4   : >> { %v477_v57 = vpop.xlane.xlu0 %476 }
 0x3d5   : >> { %v478_v58 = vsub.f32 %v470_v54, %v477_v57 }
 0x3d7   : >> { %v479_v59 = vmul.f32 1.442695, %v478_v58 }
 0x3d9   : >> { %799 = vpow2.f32 %v479_v59 }
 0x3e6   : >> { %v800_v60 = vpop.eup %799 }
 0x3e7   : >> { %v481_v61 = vsel %vm474_vm7, %v800_v60, 0.0 }
 0x3e8   : >> { %482 = vadd.xlane.f32.xlu0 %v481_v61 }
 0x471   : >> { %v483_v3 = vpop.xlane.xlu0 %482 }
 0x472   : >> { %801 = vrcp.f32 %v483_v3 }
 0x47f   : >> { %v802_v9 = vpop.eup %801 }
 0x480   : >> { %v485_v10 = vmul.f32 %v802_v9, %v800_v60 }
 0x482   : >> { %761 = vmatmul.mubr.msk.f32.vlgmr.msra.gmra.mxu1 %vm474_vm7, %v485_v10 }
 0x483   : >> { %765 = vmatprep.mubr.msk.f32.mxu1 %vm474_vm7, %v891_v7 }
 0x542   : >> { %v555_v13 = vpop.f32.mrf.mxu1 }
 0x543   : >> { %763 = vmatprep.subr.mxu1 %v555_v13 }
 0x544   : >> { %v762_v14 = vpop.f32.mrf.mxu1  ;;  %764 = vmatpush3.msra.mxu1 %v555_v13 }
 0x545   : >> { %766 = vmatmul.mubr.msk.f32.vlgmr.msra.gmra.mxu1 %vm474_vm7, %v896_v8 }
 0x604   : > { %211 = sbr.rel (!%p209_p4) target bundleno = 18 (0x12), region = 71 }
 0x605   : >> { %v767_v15 = vpop.f32.mrf.mxu1 }
 0x606   : >> { %642 = vst.msk [vmem:[%s640_s24 + $0x8] sm:$0xff] %vm384_vm5, %v767_v15 }
 0x607   : >> { %v631_v16 = vpop.f32.mrf.mxu1 }
 0x608   : >> { %641 = vst.msk [vmem:[%s640_s24] sm:$0xff] %vm384_vm5, %v631_v16 }
 0x609 PF: > { %s13_s12 = sadd.s32 1, %s813_s12  }
 0x60a   : > { %p10_p5 = scmp.ge.s32.totalorder %s13_s12, 4  }
 0x60c   :  { %12 = sbr.rel (!%p10_p5) target bundleno = 1 (0x1), region = 82 }

</bundles_post_ra>
